<compile_context>
chip_gen: v7x
topology: tpu7x:2x2x1
jax: 0.10.0
libtpu: 0.0.40
codegen_flags: <defaults>
</compile_context>

<pallas_src>
import functools

import jax
import jax.numpy as jnp
from jax.experimental import pallas as pl
from jax.experimental.pallas import tpu as pltpu


def _lstm_kernel(x_ref, wx_ref, wh_ref, b_ref, wf_ref, bf_ref, y_ref):
    """Whole-sequence LSTM recurrence + fc head in one grid-less invocation.

    x_ref : (T*B, I)  VMEM  time-major flattened input (rows t*B .. t*B+B-1 = step t)
    wx_ref: (I, 4H)   VMEM  fused input->gate weights, gate order [i, f, g, o]
    wh_ref: (H, 4H)   VMEM  fused hidden->gate weights
    b_ref : (1, 4H)   VMEM  combined bias (b_ih + b_hh)
    wf_ref: (1, H)    VMEM  fc weight row
    bf_ref: (1,)      SMEM  fc bias scalar
    y_ref : (B, T)    VMEM  fc(h_t) per (batch, timestep), already squeezed
    """
    B, T = y_ref.shape
    I = x_ref.shape[-1]
    H = wh_ref.shape[0]

    # ---- Hoist all loads out of the unrolled recurrence. --------------------
    x = x_ref[...]                                 # (T*B, I)
    wx = wx_ref[...]                               # (I, 4H)
    wh = wh_ref[...]                               # (H, 4H)
    b = b_ref[...]                                 # (1, 4H)
    wf = wf_ref[...]                               # (1, H)
    bf = bf_ref[0]                                 # scalar

    # ---- Hoisted input projection on the VPU (K = I = 4 is too small for an
    # efficient MXU push): xp = x @ Wx + b, kept as a value (2 vregs). --------
    xp = x[:, 0:1] * wx[0:1, :] + b                # (T*B, 4H)
    for k in range(1, I):
        xp = xp + x[:, k:k + 1] * wx[k:k + 1, :]

    h = jnp.zeros((B, H), jnp.float32)
    c = jnp.zeros((B, H), jnp.float32)
    ys = []

    # Recurrence: T is small and static -> fully unrolled (static indices,
    # full LLO scheduling visibility). Per step: one MXU push (h @ Wh_fused),
    # two full-width EUP pushes (sigmoid/tanh of the whole gate vreg) plus
    # tanh(c), and one XLU lane-reduce for the fc head (runs in slack).
    for t in range(T):
        gates = xp[t * B:(t + 1) * B, :] + jnp.dot(
            h, wh, preferred_element_type=jnp.float32)        # (B, 4H)
        sig = jax.nn.sigmoid(gates)                            # full-vreg EUP
        tnh = jnp.tanh(gates)                                  # full-vreg EUP
        i_g = sig[:, 0 * H:1 * H]
        f_g = sig[:, 1 * H:2 * H]
        g_g = tnh[:, 2 * H:3 * H]
        o_g = sig[:, 3 * H:4 * H]
        c = f_g * c + i_g * g_g
        h = o_g * jnp.tanh(c)                                  # 3rd EUP push
        # fc head fused into the loop (off the serial recurrence path).
        ys.append(jnp.sum(h * wf, axis=-1, keepdims=True))     # (B, 1)

    # Single lane-concatenated store instead of T masked column writes.
    y_ref[...] = jnp.concatenate(ys, axis=1) + bf              # (B, T)


def lstm_fc_pallas(x, wx, wh, b, wf, bf):
    """x: (B, T, I) float32 -> (B, T) float32 == squeeze(fc(LSTM(x)))."""
    B, T, I = x.shape
    # Wrapper-side layout plumbing (free in XLA): time-major flatten so the
    # kernel never reshapes and per-step rows are contiguous.
    x_flat = jnp.transpose(x, (1, 0, 2)).reshape(T * B, I)
    return pl.pallas_call(
        _lstm_kernel,
        out_shape=jax.ShapeDtypeStruct((B, T), jnp.float32),
        in_specs=[
            pl.BlockSpec(memory_space=pltpu.MemorySpace.VMEM),   # x (T*B, I)
            pl.BlockSpec(memory_space=pltpu.MemorySpace.VMEM),   # wx (I, 4H)
            pl.BlockSpec(memory_space=pltpu.MemorySpace.VMEM),   # wh (H, 4H)
            pl.BlockSpec(memory_space=pltpu.MemorySpace.VMEM),   # b  (1, 4H)
            pl.BlockSpec(memory_space=pltpu.MemorySpace.VMEM),   # wf (1, H)
            pl.BlockSpec(memory_space=pltpu.MemorySpace.SMEM),   # bf (1,)
        ],
        out_specs=pl.BlockSpec(memory_space=pltpu.MemorySpace.VMEM),
    )(x_flat, wx, wh, b, wf, bf)


def init_params(key, input_size, hidden_size):
    """PyTorch-layout parameters with uniform(-1/sqrt(H), 1/sqrt(H)) init."""
    H, I = hidden_size, input_size
    k = 1.0 / jnp.sqrt(jnp.float32(H))
    ks = jax.random.split(key, 6)
    # PyTorch layouts: W_ih (4H, I), W_hh (4H, H), b_ih (4H,), b_hh (4H,),
    # fc weight (1, H), fc bias (1,). Gate order [i, f, g, o].
    return dict(
        w_ih=jax.random.uniform(ks[0], (4 * H, I), jnp.float32, -k, k),
        w_hh=jax.random.uniform(ks[1], (4 * H, H), jnp.float32, -k, k),
        b_ih=jax.random.uniform(ks[2], (4 * H,), jnp.float32, -k, k),
        b_hh=jax.random.uniform(ks[3], (4 * H,), jnp.float32, -k, k),
        w_fc=jax.random.uniform(ks[4], (1, H), jnp.float32, -k, k),
        b_fc=jax.random.uniform(ks[5], (1,), jnp.float32, -k, k),
    )


def _fuse(params):
    """PyTorch layout -> kernel-friendly fused layout (gate order preserved)."""
    wx = params["w_ih"].T                                  # (I, 4H)
    wh = params["w_hh"].T                                  # (H, 4H)
    b = (params["b_ih"] + params["b_hh"]).reshape(1, -1)   # (1, 4H)
    return wx, wh, b, params["w_fc"], params["b_fc"]


@functools.partial(jax.jit, static_argnames=("target_len",))
def forward(params, x_input, targets, target_len):
    """Teacher-forcing branch of LSTM.forward; `targets`/`target_len` are
    unused there (outputs are fully replaced by fc(lstm_result(x)))."""
    del targets, target_len
    wx, wh, b, wf, bf = _fuse(params)
    return lstm_fc_pallas(x_input, wx, wh, b, wf, bf)     # (B, T)


def _reference(params, x):
    """Pure-JAX LSTM reference using the raw PyTorch weight layout."""
    B, T, _ = x.shape
    H = params["w_hh"].shape[1]
    w_ih, w_hh = params["w_ih"], params["w_hh"]
    bias = params["b_ih"] + params["b_hh"]

    def step(carry, x_t):
        h, c = carry
        g = x_t @ w_ih.T + h @ w_hh.T + bias               # (B, 4H)
        i_g = jax.nn.sigmoid(g[:, 0 * H:1 * H])
        f_g = jax.nn.sigmoid(g[:, 1 * H:2 * H])
        g_g = jnp.tanh(g[:, 2 * H:3 * H])
        o_g = jax.nn.sigmoid(g[:, 3 * H:4 * H])
        c_new = f_g * c + i_g * g_g
        h_new = o_g * jnp.tanh(c_new)
        return (h_new, c_new), h_new

    h0 = jnp.zeros((B, H), jnp.float32)
    c0 = jnp.zeros((B, H), jnp.float32)
    _, hs = jax.lax.scan(step, (h0, c0), jnp.transpose(x, (1, 0, 2)))
    hs = jnp.transpose(hs, (1, 0, 2))                      # (B, T, H)
    return jnp.sum(hs * params["w_fc"][0], axis=-1) + params["b_fc"][0]


if __name__ == "__main__":
    # Module config: input_size=4, hidden_size=[32], num_layer=[1]
    B, T, I, H = 2, 8, 4, 32
    key = jax.random.PRNGKey(0)
    k_p, k_x, k_t = jax.random.split(key, 3)

    params = init_params(k_p, I, H)
    x_input = jax.random.normal(k_x, (B, T, I), jnp.float32)
    targets = jax.random.normal(k_t, (B, T), jnp.float32)   # unused in TF branch
    target_len = T

    out = forward(params, x_input, targets, target_len)
    out = jax.block_until_ready(out)

    ref = _reference(params, x_input)
    assert out.shape == (B, T), out.shape
    assert jnp.allclose(out, ref, atol=1e-5, rtol=1e-5), (
        float(jnp.max(jnp.abs(out - ref))))

    print("KERNEL_OK")
</pallas_src>

<mosaic_0001>
module attributes {stable_mosaic.version = 11 : i64} {
  func.func @_lstm_kernel(%arg0: memref<16x4xf32, #tpu.memory_space<vmem>>, %arg1: memref<4x128xf32, #tpu.memory_space<vmem>>, %arg2: memref<32x128xf32, #tpu.memory_space<vmem>>, %arg3: memref<1x128xf32, #tpu.memory_space<vmem>>, %arg4: memref<1x32xf32, #tpu.memory_space<vmem>>, %arg5: memref<1xf32, #tpu.memory_space<smem>>, %arg6: memref<2x8xf32, #tpu.memory_space<vmem>>) attributes {dimension_semantics = [], scalar_prefetch = 0 : i64, scratch_operands = 0 : i64, tpu.core_type = #tpu.core_type<tc>} {
    %c0 = arith.constant 0 : index
    %c0_0 = arith.constant 0 : index
    %0 = vector.load %arg0[%c0, %c0_0] : memref<16x4xf32, #tpu.memory_space<vmem>>, vector<16x4xf32>
    %c0_1 = arith.constant 0 : index
    %c0_2 = arith.constant 0 : index
    %1 = vector.load %arg1[%c0_1, %c0_2] : memref<4x128xf32, #tpu.memory_space<vmem>>, vector<4x128xf32>
    %c0_3 = arith.constant 0 : index
    %c0_4 = arith.constant 0 : index
    %2 = vector.load %arg2[%c0_3, %c0_4] : memref<32x128xf32, #tpu.memory_space<vmem>>, vector<32x128xf32>
    %c0_5 = arith.constant 0 : index
    %c0_6 = arith.constant 0 : index
    %3 = vector.load %arg3[%c0_5, %c0_6] : memref<1x128xf32, #tpu.memory_space<vmem>>, vector<1x128xf32>
    %c0_7 = arith.constant 0 : index
    %c0_8 = arith.constant 0 : index
    %4 = vector.load %arg4[%c0_7, %c0_8] : memref<1x32xf32, #tpu.memory_space<vmem>>, vector<1x32xf32>
    %c0_9 = arith.constant 0 : index
    %5 = memref.load %arg5[%c0_9] : memref<1xf32, #tpu.memory_space<smem>>
    %6 = vector.extract_strided_slice %0 {offsets = [0, 0], sizes = [16, 1], strides = [1, 1]} : vector<16x4xf32> to vector<16x1xf32>
    %7 = vector.extract_strided_slice %1 {offsets = [0, 0], sizes = [1, 128], strides = [1, 1]} : vector<4x128xf32> to vector<1x128xf32>
    %8 = vector.broadcast %6 : vector<16x1xf32> to vector<16x128xf32>
    %9 = vector.broadcast %7 : vector<1x128xf32> to vector<16x128xf32>
    %10 = arith.mulf %8, %9 : vector<16x128xf32>
    %11 = vector.broadcast %3 : vector<1x128xf32> to vector<16x128xf32>
    %12 = arith.addf %10, %11 : vector<16x128xf32>
    %13 = vector.extract_strided_slice %0 {offsets = [0, 1], sizes = [16, 1], strides = [1, 1]} : vector<16x4xf32> to vector<16x1xf32>
    %14 = vector.extract_strided_slice %1 {offsets = [1, 0], sizes = [1, 128], strides = [1, 1]} : vector<4x128xf32> to vector<1x128xf32>
    %15 = vector.broadcast %13 : vector<16x1xf32> to vector<16x128xf32>
    %16 = vector.broadcast %14 : vector<1x128xf32> to vector<16x128xf32>
    %17 = arith.mulf %15, %16 : vector<16x128xf32>
    %18 = arith.addf %12, %17 : vector<16x128xf32>
    %19 = vector.extract_strided_slice %0 {offsets = [0, 2], sizes = [16, 1], strides = [1, 1]} : vector<16x4xf32> to vector<16x1xf32>
    %20 = vector.extract_strided_slice %1 {offsets = [2, 0], sizes = [1, 128], strides = [1, 1]} : vector<4x128xf32> to vector<1x128xf32>
    %21 = vector.broadcast %19 : vector<16x1xf32> to vector<16x128xf32>
    %22 = vector.broadcast %20 : vector<1x128xf32> to vector<16x128xf32>
    %23 = arith.mulf %21, %22 : vector<16x128xf32>
    %24 = arith.addf %18, %23 : vector<16x128xf32>
    %25 = vector.extract_strided_slice %0 {offsets = [0, 3], sizes = [16, 1], strides = [1, 1]} : vector<16x4xf32> to vector<16x1xf32>
    %26 = vector.extract_strided_slice %1 {offsets = [3, 0], sizes = [1, 128], strides = [1, 1]} : vector<4x128xf32> to vector<1x128xf32>
    %27 = vector.broadcast %25 : vector<16x1xf32> to vector<16x128xf32>
    %28 = vector.broadcast %26 : vector<1x128xf32> to vector<16x128xf32>
    %29 = arith.mulf %27, %28 : vector<16x128xf32>
    %30 = arith.addf %24, %29 : vector<16x128xf32>
    %cst = arith.constant 0.000000e+00 : f32
    %31 = vector.broadcast %cst : f32 to vector<2x32xf32>
    %cst_10 = arith.constant 0.000000e+00 : f32
    %32 = vector.broadcast %cst_10 : f32 to vector<2x32xf32>
    %33 = vector.extract_strided_slice %30 {offsets = [0, 0], sizes = [2, 128], strides = [1, 1]} : vector<16x128xf32> to vector<2x128xf32>
    %cst_11 = arith.constant dense<0.000000e+00> : vector<2x128xf32>
    %34 = tpu.matmul %31, %2, %cst_11 {dimension_numbers = #tpu.dot_dimension_numbers<[1], [0], [0], [1], [0, 0, 1, 1], [], []>} : vector<2x32xf32>, vector<32x128xf32>, vector<2x128xf32> -> vector<2x128xf32>
    %35 = arith.addf %33, %34 : vector<2x128xf32>
    %36 = arith.negf %35 : vector<2x128xf32>
    %37 = math.exp %36 : vector<2x128xf32>
    %cst_12 = arith.constant 1.000000e+00 : f32
    %38 = vector.broadcast %cst_12 : f32 to vector<2x128xf32>
    %39 = arith.addf %38, %37 : vector<2x128xf32>
    %40 = arith.divf %38, %39 : vector<2x128xf32>
    %41 = math.tanh %35 : vector<2x128xf32>
    %42 = vector.extract_strided_slice %40 {offsets = [0, 0], sizes = [2, 32], strides = [1, 1]} : vector<2x128xf32> to vector<2x32xf32>
    %43 = vector.extract_strided_slice %40 {offsets = [0, 32], sizes = [2, 32], strides = [1, 1]} : vector<2x128xf32> to vector<2x32xf32>
    %44 = vector.extract_strided_slice %41 {offsets = [0, 64], sizes = [2, 32], strides = [1, 1]} : vector<2x128xf32> to vector<2x32xf32>
    %45 = vector.extract_strided_slice %40 {offsets = [0, 96], sizes = [2, 32], strides = [1, 1]} : vector<2x128xf32> to vector<2x32xf32>
    %46 = arith.mulf %43, %32 : vector<2x32xf32>
    %47 = arith.mulf %42, %44 : vector<2x32xf32>
    %48 = arith.addf %46, %47 : vector<2x32xf32>
    %49 = math.tanh %48 : vector<2x32xf32>
    %50 = arith.mulf %45, %49 : vector<2x32xf32>
    %51 = vector.broadcast %4 : vector<1x32xf32> to vector<2x32xf32>
    %52 = arith.mulf %50, %51 : vector<2x32xf32>
    %cst_13 = arith.constant dense<0.000000e+00> : vector<2xf32>
    %53 = vector.multi_reduction <add>, %52, %cst_13 [1] : vector<2x32xf32> to vector<2xf32>
    %54 = vector.shape_cast %53 : vector<2xf32> to vector<2x1xf32>
    %55 = vector.extract_strided_slice %30 {offsets = [2, 0], sizes = [2, 128], strides = [1, 1]} : vector<16x128xf32> to vector<2x128xf32>
    %cst_14 = arith.constant dense<0.000000e+00> : vector<2x128xf32>
    %56 = tpu.matmul %50, %2, %cst_14 {dimension_numbers = #tpu.dot_dimension_numbers<[1], [0], [0], [1], [0, 0, 1, 1], [], []>} : vector<2x32xf32>, vector<32x128xf32>, vector<2x128xf32> -> vector<2x128xf32>
    %57 = arith.addf %55, %56 : vector<2x128xf32>
    %58 = arith.negf %57 : vector<2x128xf32>
    %59 = math.exp %58 : vector<2x128xf32>
    %cst_15 = arith.constant 1.000000e+00 : f32
    %60 = vector.broadcast %cst_15 : f32 to vector<2x128xf32>
    %61 = arith.addf %60, %59 : vector<2x128xf32>
    %62 = arith.divf %60, %61 : vector<2x128xf32>
    %63 = math.tanh %57 : vector<2x128xf32>
    %64 = vector.extract_strided_slice %62 {offsets = [0, 0], sizes = [2, 32], strides = [1, 1]} : vector<2x128xf32> to vector<2x32xf32>
    %65 = vector.extract_strided_slice %62 {offsets = [0, 32], sizes = [2, 32], strides = [1, 1]} : vector<2x128xf32> to vector<2x32xf32>
    %66 = vector.extract_strided_slice %63 {offsets = [0, 64], sizes = [2, 32], strides = [1, 1]} : vector<2x128xf32> to vector<2x32xf32>
    %67 = vector.extract_strided_slice %62 {offsets = [0, 96], sizes = [2, 32], strides = [1, 1]} : vector<2x128xf32> to vector<2x32xf32>
    %68 = arith.mulf %65, %48 : vector<2x32xf32>
    %69 = arith.mulf %64, %66 : vector<2x32xf32>
    %70 = arith.addf %68, %69 : vector<2x32xf32>
    %71 = math.tanh %70 : vector<2x32xf32>
    %72 = arith.mulf %67, %71 : vector<2x32xf32>
    %73 = vector.broadcast %4 : vector<1x32xf32> to vector<2x32xf32>
    %74 = arith.mulf %72, %73 : vector<2x32xf32>
    %cst_16 = arith.constant dense<0.000000e+00> : vector<2xf32>
    %75 = vector.multi_reduction <add>, %74, %cst_16 [1] : vector<2x32xf32> to vector<2xf32>
    %76 = vector.shape_cast %75 : vector<2xf32> to vector<2x1xf32>
    %77 = vector.extract_strided_slice %30 {offsets = [4, 0], sizes = [2, 128], strides = [1, 1]} : vector<16x128xf32> to vector<2x128xf32>
    %cst_17 = arith.constant dense<0.000000e+00> : vector<2x128xf32>
    %78 = tpu.matmul %72, %2, %cst_17 {dimension_numbers = #tpu.dot_dimension_numbers<[1], [0], [0], [1], [0, 0, 1, 1], [], []>} : vector<2x32xf32>, vector<32x128xf32>, vector<2x128xf32> -> vector<2x128xf32>
    %79 = arith.addf %77, %78 : vector<2x128xf32>
    %80 = arith.negf %79 : vector<2x128xf32>
    %81 = math.exp %80 : vector<2x128xf32>
    %cst_18 = arith.constant 1.000000e+00 : f32
    %82 = vector.broadcast %cst_18 : f32 to vector<2x128xf32>
    %83 = arith.addf %82, %81 : vector<2x128xf32>
    %84 = arith.divf %82, %83 : vector<2x128xf32>
    %85 = math.tanh %79 : vector<2x128xf32>
    %86 = vector.extract_strided_slice %84 {offsets = [0, 0], sizes = [2, 32], strides = [1, 1]} : vector<2x128xf32> to vector<2x32xf32>
    %87 = vector.extract_strided_slice %84 {offsets = [0, 32], sizes = [2, 32], strides = [1, 1]} : vector<2x128xf32> to vector<2x32xf32>
    %88 = vector.extract_strided_slice %85 {offsets = [0, 64], sizes = [2, 32], strides = [1, 1]} : vector<2x128xf32> to vector<2x32xf32>
    %89 = vector.extract_strided_slice %84 {offsets = [0, 96], sizes = [2, 32], strides = [1, 1]} : vector<2x128xf32> to vector<2x32xf32>
    %90 = arith.mulf %87, %70 : vector<2x32xf32>
    %91 = arith.mulf %86, %88 : vector<2x32xf32>
    %92 = arith.addf %90, %91 : vector<2x32xf32>
    %93 = math.tanh %92 : vector<2x32xf32>
    %94 = arith.mulf %89, %93 : vector<2x32xf32>
    %95 = vector.broadcast %4 : vector<1x32xf32> to vector<2x32xf32>
    %96 = arith.mulf %94, %95 : vector<2x32xf32>
    %cst_19 = arith.constant dense<0.000000e+00> : vector<2xf32>
    %97 = vector.multi_reduction <add>, %96, %cst_19 [1] : vector<2x32xf32> to vector<2xf32>
    %98 = vector.shape_cast %97 : vector<2xf32> to vector<2x1xf32>
    %99 = vector.extract_strided_slice %30 {offsets = [6, 0], sizes = [2, 128], strides = [1, 1]} : vector<16x128xf32> to vector<2x128xf32>
    %cst_20 = arith.constant dense<0.000000e+00> : vector<2x128xf32>
    %100 = tpu.matmul %94, %2, %cst_20 {dimension_numbers = #tpu.dot_dimension_numbers<[1], [0], [0], [1], [0, 0, 1, 1], [], []>} : vector<2x32xf32>, vector<32x128xf32>, vector<2x128xf32> -> vector<2x128xf32>
    %101 = arith.addf %99, %100 : vector<2x128xf32>
    %102 = arith.negf %101 : vector<2x128xf32>
    %103 = math.exp %102 : vector<2x128xf32>
    %cst_21 = arith.constant 1.000000e+00 : f32
    %104 = vector.broadcast %cst_21 : f32 to vector<2x128xf32>
    %105 = arith.addf %104, %103 : vector<2x128xf32>
    %106 = arith.divf %104, %105 : vector<2x128xf32>
    %107 = math.tanh %101 : vector<2x128xf32>
    %108 = vector.extract_strided_slice %106 {offsets = [0, 0], sizes = [2, 32], strides = [1, 1]} : vector<2x128xf32> to vector<2x32xf32>
    %109 = vector.extract_strided_slice %106 {offsets = [0, 32], sizes = [2, 32], strides = [1, 1]} : vector<2x128xf32> to vector<2x32xf32>
    %110 = vector.extract_strided_slice %107 {offsets = [0, 64], sizes = [2, 32], strides = [1, 1]} : vector<2x128xf32> to vector<2x32xf32>
    %111 = vector.extract_strided_slice %106 {offsets = [0, 96], sizes = [2, 32], strides = [1, 1]} : vector<2x128xf32> to vector<2x32xf32>
    %112 = arith.mulf %109, %92 : vector<2x32xf32>
    %113 = arith.mulf %108, %110 : vector<2x32xf32>
    %114 = arith.addf %112, %113 : vector<2x32xf32>
    %115 = math.tanh %114 : vector<2x32xf32>
    %116 = arith.mulf %111, %115 : vector<2x32xf32>
    %117 = vector.broadcast %4 : vector<1x32xf32> to vector<2x32xf32>
    %118 = arith.mulf %116, %117 : vector<2x32xf32>
    %cst_22 = arith.constant dense<0.000000e+00> : vector<2xf32>
    %119 = vector.multi_reduction <add>, %118, %cst_22 [1] : vector<2x32xf32> to vector<2xf32>
    %120 = vector.shape_cast %119 : vector<2xf32> to vector<2x1xf32>
    %121 = vector.extract_strided_slice %30 {offsets = [8, 0], sizes = [2, 128], strides = [1, 1]} : vector<16x128xf32> to vector<2x128xf32>
    %cst_23 = arith.constant dense<0.000000e+00> : vector<2x128xf32>
    %122 = tpu.matmul %116, %2, %cst_23 {dimension_numbers = #tpu.dot_dimension_numbers<[1], [0], [0], [1], [0, 0, 1, 1], [], []>} : vector<2x32xf32>, vector<32x128xf32>, vector<2x128xf32> -> vector<2x128xf32>
    %123 = arith.addf %121, %122 : vector<2x128xf32>
    %124 = arith.negf %123 : vector<2x128xf32>
    %125 = math.exp %124 : vector<2x128xf32>
    %cst_24 = arith.constant 1.000000e+00 : f32
    %126 = vector.broadcast %cst_24 : f32 to vector<2x128xf32>
    %127 = arith.addf %126, %125 : vector<2x128xf32>
    %128 = arith.divf %126, %127 : vector<2x128xf32>
    %129 = math.tanh %123 : vector<2x128xf32>
    %130 = vector.extract_strided_slice %128 {offsets = [0, 0], sizes = [2, 32], strides = [1, 1]} : vector<2x128xf32> to vector<2x32xf32>
    %131 = vector.extract_strided_slice %128 {offsets = [0, 32], sizes = [2, 32], strides = [1, 1]} : vector<2x128xf32> to vector<2x32xf32>
    %132 = vector.extract_strided_slice %129 {offsets = [0, 64], sizes = [2, 32], strides = [1, 1]} : vector<2x128xf32> to vector<2x32xf32>
    %133 = vector.extract_strided_slice %128 {offsets = [0, 96], sizes = [2, 32], strides = [1, 1]} : vector<2x128xf32> to vector<2x32xf32>
    %134 = arith.mulf %131, %114 : vector<2x32xf32>
    %135 = arith.mulf %130, %132 : vector<2x32xf32>
    %136 = arith.addf %134, %135 : vector<2x32xf32>
    %137 = math.tanh %136 : vector<2x32xf32>
    %138 = arith.mulf %133, %137 : vector<2x32xf32>
    %139 = vector.broadcast %4 : vector<1x32xf32> to vector<2x32xf32>
    %140 = arith.mulf %138, %139 : vector<2x32xf32>
    %cst_25 = arith.constant dense<0.000000e+00> : vector<2xf32>
    %141 = vector.multi_reduction <add>, %140, %cst_25 [1] : vector<2x32xf32> to vector<2xf32>
    %142 = vector.shape_cast %141 : vector<2xf32> to vector<2x1xf32>
    %143 = vector.extract_strided_slice %30 {offsets = [10, 0], sizes = [2, 128], strides = [1, 1]} : vector<16x128xf32> to vector<2x128xf32>
    %cst_26 = arith.constant dense<0.000000e+00> : vector<2x128xf32>
    %144 = tpu.matmul %138, %2, %cst_26 {dimension_numbers = #tpu.dot_dimension_numbers<[1], [0], [0], [1], [0, 0, 1, 1], [], []>} : vector<2x32xf32>, vector<32x128xf32>, vector<2x128xf32> -> vector<2x128xf32>
    %145 = arith.addf %143, %144 : vector<2x128xf32>
    %146 = arith.negf %145 : vector<2x128xf32>
    %147 = math.exp %146 : vector<2x128xf32>
    %cst_27 = arith.constant 1.000000e+00 : f32
    %148 = vector.broadcast %cst_27 : f32 to vector<2x128xf32>
    %149 = arith.addf %148, %147 : vector<2x128xf32>
    %150 = arith.divf %148, %149 : vector<2x128xf32>
    %151 = math.tanh %145 : vector<2x128xf32>
    %152 = vector.extract_strided_slice %150 {offsets = [0, 0], sizes = [2, 32], strides = [1, 1]} : vector<2x128xf32> to vector<2x32xf32>
    %153 = vector.extract_strided_slice %150 {offsets = [0, 32], sizes = [2, 32], strides = [1, 1]} : vector<2x128xf32> to vector<2x32xf32>
    %154 = vector.extract_strided_slice %151 {offsets = [0, 64], sizes = [2, 32], strides = [1, 1]} : vector<2x128xf32> to vector<2x32xf32>
    %155 = vector.extract_strided_slice %150 {offsets = [0, 96], sizes = [2, 32], strides = [1, 1]} : vector<2x128xf32> to vector<2x32xf32>
    %156 = arith.mulf %153, %136 : vector<2x32xf32>
    %157 = arith.mulf %152, %154 : vector<2x32xf32>
    %158 = arith.addf %156, %157 : vector<2x32xf32>
    %159 = math.tanh %158 : vector<2x32xf32>
    %160 = arith.mulf %155, %159 : vector<2x32xf32>
    %161 = vector.broadcast %4 : vector<1x32xf32> to vector<2x32xf32>
    %162 = arith.mulf %160, %161 : vector<2x32xf32>
    %cst_28 = arith.constant dense<0.000000e+00> : vector<2xf32>
    %163 = vector.multi_reduction <add>, %162, %cst_28 [1] : vector<2x32xf32> to vector<2xf32>
    %164 = vector.shape_cast %163 : vector<2xf32> to vector<2x1xf32>
    %165 = vector.extract_strided_slice %30 {offsets = [12, 0], sizes = [2, 128], strides = [1, 1]} : vector<16x128xf32> to vector<2x128xf32>
    %cst_29 = arith.constant dense<0.000000e+00> : vector<2x128xf32>
    %166 = tpu.matmul %160, %2, %cst_29 {dimension_numbers = #tpu.dot_dimension_numbers<[1], [0], [0], [1], [0, 0, 1, 1], [], []>} : vector<2x32xf32>, vector<32x128xf32>, vector<2x128xf32> -> vector<2x128xf32>
    %167 = arith.addf %165, %166 : vector<2x128xf32>
    %168 = arith.negf %167 : vector<2x128xf32>
    %169 = math.exp %168 : vector<2x128xf32>
    %cst_30 = arith.constant 1.000000e+00 : f32
    %170 = vector.broadcast %cst_30 : f32 to vector<2x128xf32>
    %171 = arith.addf %170, %169 : vector<2x128xf32>
    %172 = arith.divf %170, %171 : vector<2x128xf32>
    %173 = math.tanh %167 : vector<2x128xf32>
    %174 = vector.extract_strided_slice %172 {offsets = [0, 0], sizes = [2, 32], strides = [1, 1]} : vector<2x128xf32> to vector<2x32xf32>
    %175 = vector.extract_strided_slice %172 {offsets = [0, 32], sizes = [2, 32], strides = [1, 1]} : vector<2x128xf32> to vector<2x32xf32>
    %176 = vector.extract_strided_slice %173 {offsets = [0, 64], sizes = [2, 32], strides = [1, 1]} : vector<2x128xf32> to vector<2x32xf32>
    %177 = vector.extract_strided_slice %172 {offsets = [0, 96], sizes = [2, 32], strides = [1, 1]} : vector<2x128xf32> to vector<2x32xf32>
    %178 = arith.mulf %175, %158 : vector<2x32xf32>
    %179 = arith.mulf %174, %176 : vector<2x32xf32>
    %180 = arith.addf %178, %179 : vector<2x32xf32>
    %181 = math.tanh %180 : vector<2x32xf32>
    %182 = arith.mulf %177, %181 : vector<2x32xf32>
    %183 = vector.broadcast %4 : vector<1x32xf32> to vector<2x32xf32>
    %184 = arith.mulf %182, %183 : vector<2x32xf32>
    %cst_31 = arith.constant dense<0.000000e+00> : vector<2xf32>
    %185 = vector.multi_reduction <add>, %184, %cst_31 [1] : vector<2x32xf32> to vector<2xf32>
    %186 = vector.shape_cast %185 : vector<2xf32> to vector<2x1xf32>
    %187 = vector.extract_strided_slice %30 {offsets = [14, 0], sizes = [2, 128], strides = [1, 1]} : vector<16x128xf32> to vector<2x128xf32>
    %cst_32 = arith.constant dense<0.000000e+00> : vector<2x128xf32>
    %188 = tpu.matmul %182, %2, %cst_32 {dimension_numbers = #tpu.dot_dimension_numbers<[1], [0], [0], [1], [0, 0, 1, 1], [], []>} : vector<2x32xf32>, vector<32x128xf32>, vector<2x128xf32> -> vector<2x128xf32>
    %189 = arith.addf %187, %188 : vector<2x128xf32>
    %190 = arith.negf %189 : vector<2x128xf32>
    %191 = math.exp %190 : vector<2x128xf32>
    %cst_33 = arith.constant 1.000000e+00 : f32
    %192 = vector.broadcast %cst_33 : f32 to vector<2x128xf32>
    %193 = arith.addf %192, %191 : vector<2x128xf32>
    %194 = arith.divf %192, %193 : vector<2x128xf32>
    %195 = math.tanh %189 : vector<2x128xf32>
    %196 = vector.extract_strided_slice %194 {offsets = [0, 0], sizes = [2, 32], strides = [1, 1]} : vector<2x128xf32> to vector<2x32xf32>
    %197 = vector.extract_strided_slice %194 {offsets = [0, 32], sizes = [2, 32], strides = [1, 1]} : vector<2x128xf32> to vector<2x32xf32>
    %198 = vector.extract_strided_slice %195 {offsets = [0, 64], sizes = [2, 32], strides = [1, 1]} : vector<2x128xf32> to vector<2x32xf32>
    %199 = vector.extract_strided_slice %194 {offsets = [0, 96], sizes = [2, 32], strides = [1, 1]} : vector<2x128xf32> to vector<2x32xf32>
    %200 = arith.mulf %197, %180 : vector<2x32xf32>
    %201 = arith.mulf %196, %198 : vector<2x32xf32>
    %202 = arith.addf %200, %201 : vector<2x32xf32>
    %203 = math.tanh %202 : vector<2x32xf32>
    %204 = arith.mulf %199, %203 : vector<2x32xf32>
    %205 = vector.broadcast %4 : vector<1x32xf32> to vector<2x32xf32>
    %206 = arith.mulf %204, %205 : vector<2x32xf32>
    %cst_34 = arith.constant dense<0.000000e+00> : vector<2xf32>
    %207 = vector.multi_reduction <add>, %206, %cst_34 [1] : vector<2x32xf32> to vector<2xf32>
    %208 = vector.shape_cast %207 : vector<2xf32> to vector<2x1xf32>
    %209 = tpu.concatenate %54, %76, %98, %120, %142, %164, %186, %208 in 1 : vector<2x1xf32>, vector<2x1xf32>, vector<2x1xf32>, vector<2x1xf32>, vector<2x1xf32>, vector<2x1xf32>, vector<2x1xf32>, vector<2x1xf32> -> vector<2x8xf32>
    %210 = vector.broadcast %5 : f32 to vector<2x8xf32>
    %211 = arith.addf %209, %210 : vector<2x8xf32>
    %c0_35 = arith.constant 0 : index
    %c0_36 = arith.constant 0 : index
    %212 = vector.load %arg6[%c0_35, %c0_36] : memref<2x8xf32, #tpu.memory_space<vmem>>, vector<2x8xf32>
    tpu.vector_store %arg6[%c0_35, %c0_36], %211 {strides = array<i32>} : memref<2x8xf32, #tpu.memory_space<vmem>>, vector<2x8xf32>,
    return
  }
}

</mosaic_0001>

<bundles_post_ra>
// kernel: forward.1
= control target key start
LH: loop header
LB: loop body
LE: loop exit
PB: predicated region body
PF: predicated region fallthrough
CT: control target
= control target key end

     0   :  { %v1375_v3 = vmov 0.0|0.0   ;;  %vm1376_vm0 = vmmov 0   ;;  %v1377_v6 = vmov 0.0   ;;  %v1378_v8 = vmov 0   ;;  %s1626_s0 = inlined_call_operand.vmem [shape: f32[16,4], index: 0, kind: input, shape index: {}]   ;;  %s1627_s1 = inlined_call_operand.vmem [shape: f32[4,128], index: 1, kind: input, shape index: {}]   ;;  %s1628_s2 = inlined_call_operand.vmem [shape: f32[32,128], index: 2, kind: input, shape index: {}]   ;;  %s1629_s3 = inlined_call_operand.vmem [shape: f32[1,128], index: 3, kind: input, shape index: {}]   ;;  %s1630_s4 = inlined_call_operand.vmem [shape: f32[1,32], index: 4, kind: input, shape index: {}]   ;;  %s1631_s5 = inlined_call_operand.<no memory space> [shape: f32[1], index: 5, kind: input, shape index: {}]   ;;  %s1632_s6 = inlined_call_operand.hbm [shape: f32[2,8], index: 6, kind: output, shape index: {}]  }
   0x1   :  { %v28_v0 = vld [vmem:[%s1628_s2] sm:$0xff]  ;;  %v29_v1 = vld [vmem:[%s1628_s2 + $0x8] sm:$0xff]  ;;  %v30_v2 = vld [vmem:[%s1628_s2 + $0x10] sm:$0xff]  ;;  %1221 = vmatprep.subr.bf16.mxu0 %v1375_v3  ;;  %1141 = vmatprep.mubr.msk.f32.mxu0 %vm1376_vm0, %v1377_v6  ;;  %v1379_v9 = vmov 2  }
   0x2   :  { %v1431_v4 = vpack.c.bf16 %v29_v1, %v28_v0  ;;  %v31_v5 = vld [vmem:[%s1628_s2 + $0x18] sm:$0xff]  ;;  %v25_v7 = vld [vmem:[%s1626_s0] sm:$0xff]  ;;  %1280 = vset.pattern.permute.xlu0 %v1378_v8  ;;  %1282 = vset.pattern.permute.xlu1 %v1379_v9 }
   0x3   :  { %v1443_v10 = vpack.c.bf16 %v31_v5, %v30_v2  ;;  %37 = vperm.xlu0 %1280, %v25_v7  }
   0x4   :  { %1223 = vmatpush3.bf16.msra.mxu0 %v1431_v4 }
   0x5   :  { %12 = vsyncpa [#allocation4], 0  ;;  %1224 = vmatprep.subr.bf16.mxu0 %v1375_v3  ;;  %76 = vperm.xlu1 %1282, %v25_v7   ;;  %v1380_v11 = vmov 1   ;;  %v1381_v12 = vmov 3   ;;  %v45_v13 = vlaneseq  ;;  %v27_v16 = vld [vmem:[%s1627_s1] sm:$0xf] }
   0x6   :  { %1227 = vmatprep.subr.bf16.mxu1 %v1375_v3  ;;  %1152 = vmatprep.mubr.msk.f32.mxu1 %vm1376_vm0, %v1377_v6  ;;  %v1474_v23 = vld [vmem:[%s1629_s3] ss:$0 sm:$0xff]  ;;  %s1382_s1 = smov 64   ;;  %s1383_s3 = smov 32   ;;  %vm107_vm1 = vcmask 261120   ;;  %vm219_vm2 = vcmask 254976  }
   0x7   :  { %1229 = vmatpush3.bf16.msra.mxu1 %v1431_v4  ;;  %1281 = vset.pattern.permute.xlu0 %v1380_v11  ;;  %v46_v14 = vshrl.u32 %v45_v13, 7  ;;  %s1384_s13 = smov 96   ;;  %vm334_vm3 = vcmask 257026   ;;  %vm450_vm4 = vcmask 259076   ;;  %vm566_vm5 = vcmask 261126   ;;  %s1385_s15 = smov [#allocation3]  }
   0x8   :  { %1226 = vmatpush3.bf16.msra.mxu0 %v1443_v10  ;;  %60 = vperm.xlu0 %1281, %v25_v7   ;;  %vm1044_vm6 = vcmask 7168   ;;  %vm1046_vm7 = vcmask 15360   ;;  %vm1048_vm8 = vcmask 23552   ;;  %vm1050_vm9 = vcmask 31744   ;;  %s1068_s16 = sshll.u32 %s1385_s15, 4  ;;  %s1069_s16 = int_to_ptr.vmem [resolvable:$true] %s1068_s16 }
   0x9   :  { %1283 = vset.pattern.permute.xlu1 %v1381_v12  ;;  %1230 = vmatprep.subr.bf16.mxu1 %v1375_v3  ;;  %v47_v15 = vsub.s32 0, %v46_v14  ;;  %v69_v19 = vsub.s32 1, %v46_v14  ;;  %v85_v21 = vsub.s32 2, %v46_v14  ;;  %v101_v29 = vsub.s32 3, %v46_v14  ;;  %s1351_s17 = scalar_lea.vmem %s1069_s16, 32  ;;  %p1356_p1 = scmp.lt.s32.totalorder %s1069_s16, %s1069_s16 }
   0xa   :  { %92 = vperm.xlu1 %1283, %v25_v7   ;;  %1233 = vmatprep.subr.bf16.mxu0 %v1375_v3  ;;  %vm1052_vm10 = vcmask 39936   ;;  %vm1054_vm11 = vcmask 48128   ;;  %vm1056_vm12 = vcmask 56320   ;;  %vm1060_vm13 = vcmask 58368   ;;  %p1352_p0 = scmp.ne.s32.totalorder %s1069_s16, %s1351_s17  ;;  %p1357_p2 = scmp.lt.s32.totalorder %s1351_s17, %s1351_s17 }
   0xb   :  { %1142 = vmatmul.mubr.f32.vlgmr.msra.gmra.mrb[0].mxu0 %v1377_v6  ;;  %1232 = vmatpush3.bf16.msra.mxu1 %v1443_v10  ;;  %v1466_v18 = vrot.slane %v27_v16, %v47_v15  ;;  %v1469_v22 = vrot.slane %v27_v16, %v69_v19  ;;  %v1477_v27 = vrot.slane %v27_v16, %v85_v21 }
   0xc   :  { %1163 = vmatprep.mubr.msk.f32.mxu0 %vm1376_vm0, %v1377_v6  ;;  %1235 = vmatpush3.bf16.msra.mxu0 %v1431_v4  ;;  %v1481_v32 = vrot.slane %v27_v16, %v101_v29  ;;  %p1358_p3 = por %p1357_p2, %p1356_p1 }
   0xd   :  { %1239 = vmatprep.subr.bf16.mxu1 %v1375_v3  ;;  %1236 = vmatprep.subr.bf16.mxu0 %v1375_v3 }
   0xe   :  { %1284 = vset.pattern.permute.xlu1 %v1378_v8  ;;  %p1359_p4 = pnand %p1358_p3, %p1352_p0 }
  0x10   :  { %1238 = vmatpush3.bf16.msra.mxu0 %v1443_v10 }
  0x11   :  { %1245 = vmatprep.subr.bf16.mxu0 %v1375_v3 }
  0x82   :  { %v38_v17 = vpop.permute.xlu0 %37 }
  0x83   :  { %v49_v20 = vmul.f32 %v1466_v18, %v38_v17 }
  0x84   :  { %v77_v25 = vpop.permute.xlu1 %76 }
  0x85   :  { %v57_v26 = vadd.f32 %v1474_v23, %v49_v20  ;;  %v87_v30 = vmul.f32 %v1477_v27, %v77_v25 }
  0x87   :  { %v61_v24 = vpop.permute.xlu0 %60 }
  0x88   :  { %v71_v28 = vmul.f32 %v1469_v22, %v61_v24 }
  0x89   :  { %v93_v33 = vpop.permute.xlu1 %92 }
  0x8a   :  { %v73_v31 = vadd.f32 %v71_v28, %v57_v26  ;;  %v103_v35 = vmul.f32 %v1481_v32, %v93_v33 }
  0x8c   :  { %v89_v34 = vadd.f32 %v87_v30, %v73_v31 }
  0x8e   :  { %v1484_v36 = vadd.f32 %v103_v35, %v89_v34 }
  0xde   :  { %v177_v37 = vpop.f32.mrb[0].mxu0 }
  0xdf   :  { %v181_v38 = vadd.f32 %v177_v37, %v1484_v36  ;;  %v1143_v39 = vpop.f32.mrb[1].mxu0 }
  0xe1   :  { %1287 = vtanh.f32 %v181_v38  ;;  %v1077_v41 = vmul.f32 -1.442695, %v181_v38 }
  0xe3   :  { %1289 = vpow2.f32 %v1077_v41 }
  0xeb   :  { %v1288_v40 = vpop.eup %1287 }
  0xec   :  { %191 = vrot.lane.b32.xlu1 %v1288_v40, %s1382_s1 }
  0xed   :  { %v1290_v42 = vpop.eup %1289 }
  0xee   :  { %v185_v43 = vadd.f32 1.0, %v1290_v42 }
  0xf0   :  { %1291 = vrcp.f32 %v185_v43 }
  0xfa   :  { %v1292_v44 = vpop.eup %1291 }
  0xfb   :  { %v189_v47 = vmul.f32 0.0, %v1292_v44 }
 0x15e   :  { %v192_v45 = vpop.permute.xlu1 %191 }
 0x15f   :  { %v194_v46 = vmul.f32 %v1292_v44, %v192_v45 }
 0x161   :  { %196 = vrot.lane.b32.xlu0 %v194_v46, %s1383_s3 }
 0x1d3   :  { %v197_v48 = vpop.permute.xlu0 %196 }
 0x1d4   :  { %v199_v49 = vadd.f32 %v197_v48, %v189_v47 }
 0x1d6   :  { %1293 = vtanh.f32 %v199_v49  ;;  %v310_v1 = vrot.slane %v199_v49, 6 }
 0x1e0   :  { %v1294_v50 = vpop.eup %1293 }
 0x1e1   :  { %202 = vrot.lane.b32.xlu1 %v1294_v50, %s1382_s1 }
 0x253   :  { %v203_v51 = vpop.permute.xlu1 %202 }
 0x254   :  { %v1490_v52 = vmul.f32 %v1292_v44, %v203_v51 }
 0x256   :  { %224 = vrot.lane.b32.xlu0 %v1490_v52, %s1383_s3 }
 0x2c8   :  { %v225_v53 = vpop.permute.xlu0 %224 }
 0x2c9   :  { %1153 = vmatmul.mubr.msk.f32.vlgmr.msra.gmra.mrb[0].mxu1 %vm107_vm1, %v225_v53 }
 0x2ca   :  { %1241 = vmatpush3.bf16.msra.mxu1 %v1431_v4  ;;  %1174 = vmatprep.mubr.msk.f32.mxu1 %vm1376_vm0, %v1377_v6 }
 0x2cb   :  { %1242 = vmatprep.subr.bf16.mxu1 %v1375_v3 }
 0x2ce   :  { %1244 = vmatpush3.bf16.msra.mxu1 %v1443_v10 }
 0x2cf   :  { %1251 = vmatprep.subr.bf16.mxu1 %v1375_v3 }
 0x39c   :  { %v294_v54 = vpop.f32.mrb[0].mxu1 }
 0x39d   :  { %v299_v55 = vrot.slane %v294_v54, 6  ;;  %v1154_v56 = vpop.f32.mrb[1].mxu1 }
 0x39f   :  { %v301_v57 = vadd.f32 %v299_v55, %v1484_v36 }
 0x3a1   :  { %1295 = vtanh.f32 %v301_v57  ;;  %v1080_v59 = vmul.f32 -1.442695, %v301_v57 }
 0x3a3   :  { %1297 = vpow2.f32 %v1080_v59 }
 0x3ab   :  { %v1296_v58 = vpop.eup %1295 }
 0x3ac   :  { %314 = vrot.lane.b32.xlu1 %v1296_v58, %s1382_s1  ;;  %v26_v58 = vld [vmem:[%s1626_s0 + $0x8] sm:$0xff] }
 0x3ad   :  { %v1298_v60 = vpop.eup %1297 }
 0x3ae   :  { %v305_v61 = vadd.f32 1.0, %v1298_v60 }
 0x3b0   :  { %1299 = vrcp.f32 %v305_v61 }
 0x3ba   :  { %v1300_v62 = vpop.eup %1299 }
 0x3bb   :  { %v312_v2 = vmul.f32 %v1300_v62, %v310_v1 }
 0x41e   :  { %v315_v63 = vpop.permute.xlu1 %314 }
 0x41f   :  { %v317_v0 = vmul.f32 %v1300_v62, %v315_v63 }
 0x421   :  { %319 = vrot.lane.b32.xlu0 %v317_v0, %s1383_s3 }
 0x493   :  { %v320_v5 = vpop.permute.xlu0 %319 }
 0x494   :  { %v322_v7 = vadd.f32 %v320_v5, %v312_v2 }
 0x496   :  { %1301 = vtanh.f32 %v322_v7  ;;  %v426_v31 = vrot.slane %v322_v7, 6 }
 0x4a0   :  { %v1302_v8 = vpop.eup %1301 }
 0x4a1   :  { %325 = vrot.lane.b32.xlu1 %v1302_v8, %s1382_s1 }
 0x513   :  { %v326_v11 = vpop.permute.xlu1 %325 }
 0x514   :  { %v1505_v13 = vmul.f32 %v1300_v62, %v326_v11 }
 0x516   :  { %v339_v14 = vrot.slane %v1505_v13, 2 }
 0x518   :  { %340 = vrot.lane.b32.xlu0 %v339_v14, %s1383_s3 }
 0x58a   :  { %v341_v15 = vpop.permute.xlu0 %340 }
 0x58b   :  { %1164 = vmatmul.mubr.msk.f32.vlgmr.msra.gmra.mrb[2].mxu0 %vm107_vm1, %v341_v15 }
 0x58c   :  { %1247 = vmatpush3.bf16.msra.mxu0 %v1431_v4  ;;  %1185 = vmatprep.mubr.msk.f32.mxu0 %vm1376_vm0, %v1377_v6 }
 0x58d   :  { %1248 = vmatprep.subr.bf16.mxu0 %v1375_v3 }
 0x590   :  { %1250 = vmatpush3.bf16.msra.mxu0 %v1443_v10 }
 0x591   :  { %1257 = vmatprep.subr.bf16.mxu0 %v1375_v3 }
 0x65e   :  { %v410_v16 = vpop.f32.mrb[2].mxu0 }
 0x65f   :  { %v415_v17 = vrot.slane %v410_v16, 4  ;;  %v1165_v19 = vpop.f32.mrb[3].mxu0 }
 0x661   :  { %v417_v20 = vadd.f32 %v415_v17, %v1484_v36 }
 0x663   :  { %1303 = vtanh.f32 %v417_v20  ;;  %v1082_v24 = vmul.f32 -1.442695, %v417_v20 }
 0x665   :  { %1305 = vpow2.f32 %v1082_v24 }
 0x66d   :  { %v1304_v21 = vpop.eup %1303 }
 0x66e   :  { %430 = vrot.lane.b32.xlu1 %v1304_v21, %s1382_s1 }
 0x66f   :  { %v1306_v25 = vpop.eup %1305 }
 0x670   :  { %v421_v26 = vadd.f32 1.0, %v1306_v25 }
 0x672   :  { %1307 = vrcp.f32 %v421_v26 }
 0x67c   :  { %v1308_v28 = vpop.eup %1307 }
 0x67d   :  { %v428_v33 = vmul.f32 %v1308_v28, %v426_v31 }
 0x6e0   :  { %v431_v29 = vpop.permute.xlu1 %430 }
 0x6e1   :  { %v433_v30 = vmul.f32 %v1308_v28, %v431_v29 }
 0x6e3   :  { %435 = vrot.lane.b32.xlu0 %v433_v30, %s1383_s3 }
 0x755   :  { %v436_v34 = vpop.permute.xlu0 %435 }
 0x756   :  { %v438_v35 = vadd.f32 %v436_v34, %v428_v33 }
 0x758   :  { %1309 = vtanh.f32 %v438_v35  ;;  %v542_v54 = vrot.slane %v438_v35, 6 }
 0x762   :  { %v1310_v37 = vpop.eup %1309 }
 0x763   :  { %441 = vrot.lane.b32.xlu1 %v1310_v37, %s1382_s1 }
 0x7d5   :  { %v442_v38 = vpop.permute.xlu1 %441 }
 0x7d6   :  { %v1520_v39 = vmul.f32 %v1308_v28, %v442_v38 }
 0x7d8   :  { %v455_v40 = vrot.slane %v1520_v39, 4 }
 0x7da   :  { %456 = vrot.lane.b32.xlu0 %v455_v40, %s1383_s3 }
 0x84c   :  { %v457_v41 = vpop.permute.xlu0 %456 }
 0x84d   :  { %1175 = vmatmul.mubr.msk.f32.vlgmr.msra.gmra.mrb[2].mxu1 %vm107_vm1, %v457_v41 }
 0x84e   :  { %1253 = vmatpush3.bf16.msra.mxu1 %v1431_v4  ;;  %1196 = vmatprep.mubr.msk.f32.mxu1 %vm1376_vm0, %v1377_v6 }
 0x84f   :  { %1254 = vmatprep.subr.bf16.mxu1 %v1375_v3 }
 0x852   :  { %1256 = vmatpush3.bf16.msra.mxu1 %v1443_v10 }
 0x853   :  { %1263 = vmatprep.subr.bf16.mxu1 %v1375_v3 }
 0x920   :  { %v526_v42 = vpop.f32.mrb[2].mxu1 }
 0x921   :  { %v531_v43 = vrot.slane %v526_v42, 2  ;;  %v1176_v44 = vpop.f32.mrb[3].mxu1 }
 0x923   :  { %v533_v45 = vadd.f32 %v531_v43, %v1484_v36 }
 0x925   :  { %1311 = vtanh.f32 %v533_v45  ;;  %v1084_v47 = vmul.f32 -1.442695, %v533_v45 }
 0x927   :  { %1313 = vpow2.f32 %v1084_v47 }
 0x92f   :  { %v1312_v46 = vpop.eup %1311 }
 0x930   :  { %546 = vrot.lane.b32.xlu1 %v1312_v46, %s1382_s1 }
 0x931   :  { %v1314_v48 = vpop.eup %1313 }
 0x932   :  { %v537_v49 = vadd.f32 1.0, %v1314_v48 }
 0x934   :  { %1315 = vrcp.f32 %v537_v49 }
 0x93e   :  { %v1316_v50 = vpop.eup %1315 }
 0x93f   :  { %v544_v55 = vmul.f32 %v1316_v50, %v542_v54 }
 0x9a2   :  { %v547_v51 = vpop.permute.xlu1 %546 }
 0x9a3   :  { %v549_v53 = vmul.f32 %v1316_v50, %v547_v51 }
 0x9a5   :  { %551 = vrot.lane.b32.xlu0 %v549_v53, %s1383_s3 }
 0xa17   :  { %v552_v56 = vpop.permute.xlu0 %551 }
 0xa18   :  { %v554_v57 = vadd.f32 %v552_v56, %v544_v55 }
 0xa1a   :  { %1317 = vtanh.f32 %v554_v57 }
 0xa24   :  { %v1318_v36 = vpop.eup %1317 }
 0xa25   :  { %557 = vrot.lane.b32.xlu1 %v1318_v36, %s1382_s1 }
 0xa29   :  { %42 = vperm.xlu1 %1284, %v26_v58  }
 0xa2d   :  { %1285 = vset.pattern.permute.xlu1 %v1379_v9 }
 0xa2e   :  { %80 = vperm.xlu1 %1285, %v26_v58  }
 0xa97   :  { %v558_v59 = vpop.permute.xlu1 %557 }
 0xa98   :  { %v1539_v60 = vmul.f32 %v1316_v50, %v558_v59 }
 0xa9a   :  { %v571_v61 = vrot.slane %v1539_v60, 6 }
 0xa9c   :  { %572 = vrot.lane.b32.xlu0 %v571_v61, %s1383_s3 }
 0xaa0   :  { %64 = vperm.xlu0 %1281, %v26_v58  }
 0xaa4   :  { %1286 = vset.pattern.permute.xlu0 %v1381_v12 }
 0xaa5   :  { %96 = vperm.xlu0 %1286, %v26_v58  }
 0xaa8   :  { %v43_v9 = vpop.permute.xlu1 %42 }
 0xaa9   :  { %v50_v63 = vmul.f32 %v1466_v18, %v43_v9 }
 0xaab   :  { %v58_v1 = vadd.f32 %v1474_v23, %v50_v63 }
 0xaad   :  { %v81_v2 = vpop.permute.xlu1 %80 }
 0xaae   :  { %v88_v7 = vmul.f32 %v1477_v27, %v81_v2 }
 0xb0e   :  { %v573_v62 = vpop.permute.xlu0 %572 }
 0xb0f   :  { %1186 = vmatmul.mubr.msk.f32.vlgmr.msra.gmra.mrb[4].mxu0 %vm107_vm1, %v573_v62 }
 0xb10   :  { %1259 = vmatpush3.bf16.msra.mxu0 %v1431_v4  ;;  %1207 = vmatprep.mubr.msk.f32.mxu0 %vm1376_vm0, %v1377_v6 }
 0xb11   :  { %1260 = vmatprep.subr.bf16.mxu0 %v1375_v3 }
 0xb14   :  { %1262 = vmatpush3.bf16.msra.mxu0 %v1443_v10 }
 0xb1f   :  { %v65_v0 = vpop.permute.xlu0 %64 }
 0xb20   :  { %v72_v12 = vmul.f32 %v1469_v22, %v65_v0 }
 0xb22   :  { %v74_v5 = vadd.f32 %v72_v12, %v58_v1 }
 0xb24   :  { %v97_v8 = vpop.permute.xlu0 %96  ;;  %v90_v11 = vadd.f32 %v88_v7, %v74_v5 }
 0xb25   :  { %v104_v14 = vmul.f32 %v1481_v32, %v97_v8  ;;  %v655_v32 = vrot.slane %v554_v57, 6 }
 0xb27   :  { %v1555_v15 = vadd.f32 %v104_v14, %v90_v11 }
 0xbe2   :  { %v642_v16 = vpop.f32.mrb[4].mxu0 }
 0xbe3   :  { %v646_v17 = vadd.f32 %v642_v16, %v1555_v15  ;;  %v1187_v19 = vpop.f32.mrb[5].mxu0 }
 0xbe5   :  { %1319 = vtanh.f32 %v646_v17  ;;  %v1086_v23 = vmul.f32 -1.442695, %v646_v17 }
 0xbe7   :  { %1321 = vpow2.f32 %v1086_v23  ;;  %v1078_v23 = vld [vmem:[%s1630_s4] ss:$0 sm:$0xff] }
 0xbef   :  { %v1320_v18 = vpop.eup %1319 }
 0xbf0   :  { %659 = vrot.lane.b32.xlu1 %v1320_v18, %s1382_s1 }
 0xbf1   :  { %v1322_v22 = vpop.eup %1321 }
 0xbf2   :  { %v650_v20 = vadd.f32 1.0, %v1322_v22 }
 0xbf4   :  { %1323 = vrcp.f32 %v650_v20 }
 0xbfe   :  { %v1324_v27 = vpop.eup %1323 }
 0xbff   :  { %v657_v25 = vmul.f32 %v1324_v27, %v655_v32 }
 0xc62   :  { %v660_v21 = vpop.permute.xlu1 %659 }
 0xc63   :  { %v662_v24 = vmul.f32 %v1324_v27, %v660_v21 }
 0xc65   :  { %664 = vrot.lane.b32.xlu1 %v662_v24, %s1383_s3 }
 0xcd7   :  { %v665_v26 = vpop.permute.xlu1 %664 }
 0xcd8   :  { %v667_v28 = vadd.f32 %v665_v26, %v657_v25 }
 0xcda   :  { %1325 = vtanh.f32 %v667_v28 }
 0xce4   :  { %v1326_v29 = vpop.eup %1325 }
 0xce5   :  { %670 = vrot.lane.b32.xlu0 %v1326_v29, %s1382_s1 }
 0xd57   :  { %v671_v30 = vpop.permute.xlu0 %670 }
 0xd58   :  { %v1561_v31 = vmul.f32 %v1324_v27, %v671_v30 }
 0xd5a   :  { %683 = vrot.lane.b32.xlu1 %v1561_v31, %s1383_s3 }
 0xdcc   :  { %v684_v33 = vpop.permute.xlu1 %683 }
 0xdcd   :  { %1197 = vmatmul.mubr.msk.f32.vlgmr.msra.gmra.mrb[4].mxu1 %vm107_vm1, %v684_v33 }
 0xdce   :  { %1265 = vmatpush3.bf16.msra.mxu1 %v1431_v4  ;;  %1218 = vmatprep.mubr.msk.f32.mxu1 %vm1376_vm0, %v1377_v6 }
 0xdcf   :  { %1266 = vmatprep.subr.bf16.mxu1 %v1375_v3  ;;  %v769_v3 = vrot.slane %v667_v28, 6 }
 0xdd2   :  { %1268 = vmatpush3.bf16.msra.mxu1 %v1443_v10 }
 0xea0   :  { %v753_v34 = vpop.f32.mrb[4].mxu1 }
 0xea1   :  { %v758_v35 = vrot.slane %v753_v34, 6  ;;  %v1198_v37 = vpop.f32.mrb[5].mxu1 }
 0xea3   :  { %v760_v38 = vadd.f32 %v758_v35, %v1555_v15 }
 0xea5   :  { %1327 = vtanh.f32 %v760_v38  ;;  %v1088_v41 = vmul.f32 -1.442695, %v760_v38 }
 0xea7   :  { %1329 = vpow2.f32 %v1088_v41 }
 0xeaf   :  { %v1328_v40 = vpop.eup %1327 }
 0xeb0   :  { %773 = vrot.lane.b32.xlu0 %v1328_v40, %s1382_s1 }
 0xeb1   :  { %v1330_v42 = vpop.eup %1329 }
 0xeb2   :  { %v764_v4 = vadd.f32 1.0, %v1330_v42 }
 0xeb4   :  { %1331 = vrcp.f32 %v764_v4 }
 0xebe   :  { %v1332_v43 = vpop.eup %1331 }
 0xebf   :  { %v771_v10 = vmul.f32 %v1332_v43, %v769_v3 }
 0xf22   :  { %v774_v6 = vpop.permute.xlu0 %773 }
 0xf23   :  { %v776_v44 = vmul.f32 %v1332_v43, %v774_v6 }
 0xf25   :  { %778 = vrot.lane.b32.xlu1 %v776_v44, %s1383_s3 }
 0xf97   :  { %v779_v45 = vpop.permute.xlu1 %778 }
 0xf98   :  { %v781_v46 = vadd.f32 %v779_v45, %v771_v10 }
 0xf9a   :  { %1333 = vtanh.f32 %v781_v46  ;;  %v884_v63 = vrot.slane %v781_v46, 6 }
 0xfa4   :  { %v1334_v47 = vpop.eup %1333 }
 0xfa5   :  { %784 = vrot.lane.b32.xlu0 %v1334_v47, %s1382_s1 }
0x1017   :  { %v785_v48 = vpop.permute.xlu0 %784 }
0x1018   :  { %v1575_v49 = vmul.f32 %v1332_v43, %v785_v48 }
0x101a   :  { %v797_v50 = vrot.slane %v1575_v49, 2 }
0x101c   :  { %798 = vrot.lane.b32.xlu1 %v797_v50, %s1383_s3 }
0x108e   :  { %v799_v51 = vpop.permute.xlu1 %798 }
0x108f   :  { %1208 = vmatmul.mubr.msk.f32.vlgmr.msra.gmra.mrb[6].mxu0 %vm107_vm1, %v799_v51 }
0x1162   :  { %v868_v53 = vpop.f32.mrb[6].mxu0 }
0x1163   :  { %v873_v54 = vrot.slane %v868_v53, 4  ;;  %v1209_v55 = vpop.f32.mrb[7].mxu0 }
0x1165   :  { %v875_v56 = vadd.f32 %v873_v54, %v1555_v15 }
0x1167   :  { %1335 = vtanh.f32 %v875_v56  ;;  %v1090_v36 = vmul.f32 -1.442695, %v875_v56 }
0x1169   :  { %1337 = vpow2.f32 %v1090_v36 }
0x1171   :  { %v1336_v57 = vpop.eup %1335 }
0x1172   :  { %888 = vrot.lane.b32.xlu0 %v1336_v57, %s1382_s1 }
0x1173   :  { %v1338_v58 = vpop.eup %1337 }
0x1174   :  { %v879_v59 = vadd.f32 1.0, %v1338_v58 }
0x1176   :  { %1339 = vrcp.f32 %v879_v59 }
0x1180   :  { %v1340_v61 = vpop.eup %1339 }
0x1181   :  { %v886_v0 = vmul.f32 %v1340_v61, %v884_v63 }
0x11e4   :  { %v889_v62 = vpop.permute.xlu0 %888 }
0x11e5   :  { %v891_v9 = vmul.f32 %v1340_v61, %v889_v62 }
0x11e7   :  { %893 = vrot.lane.b32.xlu1 %v891_v9, %s1383_s3 }
0x1259   :  { %v894_v1 = vpop.permute.xlu1 %893 }
0x125a   :  { %v896_v12 = vadd.f32 %v894_v1, %v886_v0 }
0x125c   :  { %1341 = vtanh.f32 %v896_v12  ;;  %v999_v26 = vrot.slane %v896_v12, 6 }
0x1266   :  { %v1342_v2 = vpop.eup %1341 }
0x1267   :  { %899 = vrot.lane.b32.xlu0 %v1342_v2, %s1382_s1 }
0x12d9   :  { %v900_v5 = vpop.permute.xlu0 %899 }
0x12da   :  { %v902_v7 = vmul.f32 %v1340_v61, %v900_v5 }
0x12dc   :  { %v912_v8 = vrot.slane %v902_v7, 4 }
0x12de   :  { %913 = vrot.lane.b32.xlu1 %v912_v8, %s1383_s3 }
0x1350   :  { %v914_v11 = vpop.permute.xlu1 %913 }
0x1351   :  { %1219 = vmatmul.mubr.msk.f32.vlgmr.msra.gmra.mrb[6].mxu1 %vm107_vm1, %v914_v11  ;;  %v1058_v11 = vstv %s1631_s5 }
0x1424   :  { %v983_v14 = vpop.f32.mrb[6].mxu1 }
0x1425   :  { %v988_v16 = vrot.slane %v983_v14, 2  ;;  %v1220_v17 = vpop.f32.mrb[7].mxu1 }
0x1427   :  { %v990_v19 = vadd.f32 %v988_v16, %v1555_v15 }
0x1429   :  { %1343 = vtanh.f32 %v990_v19  ;;  %v1092_v22 = vmul.f32 -1.442695, %v990_v19 }
0x142b   :  { %1345 = vpow2.f32 %v1092_v22 }
0x1433   :  { %v1344_v18 = vpop.eup %1343 }
0x1434   :  { %1003 = vrot.lane.b32.xlu0 %v1344_v18, %s1382_s1 }
0x1435   :  { %v1346_v20 = vpop.eup %1345 }
0x1436   :  { %v994_v27 = vadd.f32 1.0, %v1346_v20 }
0x1438   :  { %211 = vrot.lane.b32.xlu0 %v1078_v23, %s1384_s13  ;;  %1347 = vrcp.f32 %v994_v27 }
0x1442   :  { %v1348_v21 = vpop.eup %1347 }
0x1443   :  { %v1001_v28 = vmul.f32 %v1348_v21, %v999_v26 }
0x14a6   :  { %v1004_v24 = vpop.permute.xlu0 %1003 }
0x14a7   :  { %v1006_v32 = vmul.f32 %v1348_v21, %v1004_v24 }
0x14a9   :  { %1008 = vrot.lane.b32.xlu1 %v1006_v32, %s1383_s3 }
0x14aa   :  { %v212_v15 = vpop.permute.xlu0 %211 }
0x14ab   :  { %v214_v25 = vmul.f32 %v212_v15, %v1490_v52  ;;  %v329_v37 = vmul.f32 %v1505_v13, %v212_v15  ;;  %v445_v52 = vmul.f32 %v1520_v39, %v212_v15  ;;  %v788_v38 = vmul.f32 %v1575_v49, %v212_v15 }
0x14ac   :  { %v674_v40 = vmul.f32 %v1561_v31, %v212_v15  ;;  %v903_v41 = vmul.f32 %v902_v7, %v212_v15  ;;  %v561_v47 = vmul.f32 %v1539_v60, %v212_v15 }
0x14ad   :  { %216 = vrot.lane.b32.xlu1 %v214_v25, %s1383_s3 }
0x151b   :  { %v1009_v29 = vpop.permute.xlu1 %1008 }
0x151c   :  { %v1011_v30 = vadd.f32 %v1009_v29, %v1001_v28 }
0x151e   :  { %1349 = vtanh.f32 %v1011_v30 }
0x151f   :  { %v217_v33 = vpop.permute.xlu1 %216 }
0x1520   :  { %v220_v34 = vsel %vm219_vm2, %v217_v33, 0.0 }
0x1521   :  { %221 = vadd.xlane.f32.xlu0 %v220_v34 }
0x1528   :  { %v1350_v35 = vpop.eup %1349 }
0x1529   :  { %1014 = vrot.lane.b32.xlu1 %v1350_v35, %s1382_s1 }
0x152d   :  { %331 = vrot.lane.b32.xlu1 %v329_v37, %s1383_s3 }
0x1537   :  { %447 = vrot.lane.b32.xlu0 %v445_v52, %s1383_s3 }
0x153b   :  { %790 = vrot.lane.b32.xlu0 %v788_v38, %s1383_s3 }
0x153f   :  { %676 = vrot.lane.b32.xlu0 %v674_v40, %s1383_s3 }
0x1543   :  { %905 = vrot.lane.b32.xlu0 %v903_v41, %s1383_s3 }
0x159b   :  { %v1015_v42 = vpop.permute.xlu1 %1014 }
0x159c   :  { %v1017_v4 = vmul.f32 %v1348_v21, %v1015_v42 }
0x159e   :  { %v1018_v13 = vmul.f32 %v1017_v4, %v212_v15 }
0x159f   :  { %v332_v43 = vpop.permute.xlu1 %331 }
0x15a0   :  { %1020 = vrot.lane.b32.xlu0 %v1018_v13, %s1383_s3  ;;  %v335_v39 = vsel %vm334_vm3, %v332_v43, 0.0 }
0x15a1   :  { %336 = vadd.xlane.f32.xlu1 %v335_v39 }
0x15ae   :  { %v222_v6 = vpop.xlane.xlu0 %221 }
0x15b2   :  { %v448_v44 = vpop.permute.xlu0 %447 }
0x15b3   :  { %v451_v3 = vsel %vm450_vm4, %v448_v44, 0.0 }
0x15b4   :  { %452 = vadd.xlane.f32.xlu1 %v451_v3 }
0x15b6   :  { %v791_v31 = vpop.permute.xlu0 %790 }
0x15b7   :  { %v793_v46 = vsel %vm334_vm3, %v791_v31, 0.0 }
0x15ba   :  { %v677_v10 = vpop.permute.xlu0 %676 }
0x15bb   :  { %v679_v45 = vsel %vm219_vm2, %v677_v10, 0.0 }
0x15be   :  { %v906_v48 = vpop.permute.xlu0 %905 }
0x15bf   :  { %680 = vadd.xlane.f32.xlu0 %v679_v45  ;;  %v908_v60 = vsel %vm450_vm4, %v906_v48, 0.0 }
0x15c3   :  { %794 = vadd.xlane.f32.xlu0 %v793_v46 }
0x15c5   :  { %563 = vrot.lane.b32.xlu1 %v561_v47, %s1383_s3 }
0x1612   :  { %v1021_v49 = vpop.permute.xlu0 %1020 }
0x1613   :  { %v1023_v50 = vsel %vm566_vm5, %v1021_v49, 0.0 }
0x1614   :  { %1024 = vadd.xlane.f32.xlu0 %v1023_v50 }
0x162e   :  { %v337_v51 = vpop.xlane.xlu1 %336 }
0x162f   :  { %v1027_v53 = vrot.slane %v337_v51, 2 }
0x1631   :  { %v1045_v56 = vsel %vm1044_vm6, %v222_v6, %v1027_v53 }
0x1641   :  { %v453_v54 = vpop.xlane.xlu1 %452 }
0x1642   :  { %v1030_v55 = vrot.slane %v453_v54, 4 }
0x1644   :  { %v1047_v57 = vsel %vm1046_vm7, %v1045_v56, %v1030_v55 }
0x1645   :  { %v564_v36 = vpop.permute.xlu1 %563 }
0x1646   :  { %v567_v58 = vsel %vm566_vm5, %v564_v36, 0.0 }
0x1647   :  { %568 = vadd.xlane.f32.xlu1 %v567_v58 }
0x164b   :  { %909 = vadd.xlane.f32.xlu1 %v908_v60 }
0x164c   :  { %v681_v59 = vpop.xlane.xlu0 %680 }
0x1650   :  { %v795_v61 = vpop.xlane.xlu0 %794 }
0x1651   :  { %v1036_v63 = vrot.slane %v795_v61, 2 }
0x16a1   :  { %v1025_v0 = vpop.xlane.xlu0 %1024 }
0x16a2   :  { %v1042_v8 = vrot.slane %v1025_v0, 6 }
0x16d4   :  { %v569_v62 = vpop.xlane.xlu1 %568 }
0x16d5   :  { %v1033_v9 = vrot.slane %v569_v62, 6 }
0x16d7   :  { %v1049_v1 = vsel %vm1048_vm8, %v1047_v57, %v1033_v9 }
0x16d8   :  { %v1051_v12 = vsel %vm1050_vm9, %v1049_v1, %v681_v59  ;;  %v910_v2 = vpop.xlane.xlu1 %909 }
0x16d9   :  { %v1053_v5 = vsel %vm1052_vm10, %v1051_v12, %v1036_v63  ;;  %v1039_v7 = vrot.slane %v910_v2, 4 }
0x16db   :  { %v1055_v14 = vsel %vm1054_vm11, %v1053_v5, %v1039_v7 }
0x16dc   :  { %v1057_v16 = vsel %vm1056_vm12, %v1055_v14, %v1042_v8 }
0x16dd   :  { %v1059_v17 = vadd.f32 %v1058_v11, %v1057_v16 }
0x16df   :  { %1061 = vst.msk [vmem:[#allocation3] sm:$0x3] %vm1060_vm13, %v1059_v17 }
0x16e0   :  { %1362 = shalt.err (!%p1359_p4)
}
0x16e1   :  { %s1363_s20 = scalar_lea.hbm %s1632_s6, 32 }
0x16e2   :  { %p1364_p5 = scmp.ne.s32.totalorder %s1632_s6, %s1363_s20  ;;  %p1367_p6 = scmp.lt.u32.totalorder %s1363_s20, %s1632_s6 }
0x16e4   :  { %p1369_p7 = pnand %p1367_p6, %p1364_p5 }
0x16e6   :  { %1372 = shalt.err (!%p1369_p7)
}
0x16e7   :  { %1071 = dma.vmem_to_hbm [thread:$0]  %s1069_s16, 32, %s1632_s6, [#allocation4]  }
0x16e8   :  { %1373 = dma.done.wait [#allocation4], 32  }
0x16e9   :  { %1374 = vsyncadd [#allocation4], 4294967264 }
0x16ea   :  { %1075 = vsyncpa [#allocation4], 1 }

</bundles_post_ra>
